<compile_context>
chip_gen: v7x
topology: tpu7x:2x2x1
jax: 0.10.0
libtpu: 0.0.40
codegen_flags: <defaults>
</compile_context>

<pallas_src>
import math

import jax
import jax.numpy as jnp
from jax.experimental import pallas as pl
from jax.experimental.pallas import tpu as pltpu


_LANES = 128
_MAX_LANE_COLS = 1024
_MAX_TILE_BYTES = 8 * 1024 * 1024       # per-tile cap; x2 refs x2 buffers => <= 32 MiB VMEM
_VMEM_LIMIT_BYTES = 40 * 1024 * 1024    # < 64 MiB (v7x physical); > default scoped limits
_MULTI_STEP_BYTES = 1 * 1024 * 1024     # split >= 1 MiB tensors into >= 2 grid steps (megacore)


def _copy_kernel(x_ref, o_ref):
    # Whole-tile pass-through of a lane-dense (block_rows, cols) VMEM block.
    o_ref[...] = x_ref[...]


def _sublane_multiple(dtype) -> int:
    # Packed-sublane multiple: 8 for 32-bit, 16 for bf16/f16, 32 for int8/fp8.
    itemsize = jnp.dtype(dtype).itemsize
    return max(8, 32 // max(1, itemsize))


def inception_block_v3_f6_forward(x: jax.Array) -> jax.Array:
    """Pallas implementation of InceptionBlockV3_F6.forward.

    The reference forward is an empty stub, so this is an identity mapping executed
    as a lane-dense tiled Pallas copy kernel with in/out buffer aliasing.
    """
    orig_shape = x.shape
    dtype = x.dtype
    itemsize = jnp.dtype(dtype).itemsize
    total = math.prod(orig_shape) if orig_shape else 1
    total_bytes = total * itemsize
    sub = _sublane_multiple(dtype)

    # Lane-dense 2-D slab: widen the last dim up to 1024 lanes while at least `sub`
    # rows of real data remain (so the sublane dim of a vreg stays full).
    cols = _LANES
    while cols * 2 <= _MAX_LANE_COLS and total >= cols * 2 * sub:
        cols *= 2
    rows = -(-total // cols)            # cdiv
    padded_total = rows * cols

    flat = x.reshape(total)
    if padded_total != total:
        # Pad to a lane-dense multiple of `cols`; the tail is dead data that gets
        # copied along and sliced off afterwards (waste < cols elements).
        flat = jnp.pad(flat, (0, padded_total - total))
    x2d = flat.reshape(rows, cols)

    # Row-tile: largest sublane-multiple block under the byte budget; the final grid
    # step may be ragged (masked) instead of forcing rows % block_rows == 0.
    cap_rows = max(sub, (_MAX_TILE_BYTES // (cols * itemsize)) // sub * sub)
    want_multi = total_bytes > _MULTI_STEP_BYTES   # >= 2 steps -> v7x 2-TC sharding
    if rows <= cap_rows and not want_multi:
        block_rows = rows               # full extent: always a legal block dim
    else:
        block_rows = cap_rows
        if want_multi:
            half = (rows + 1) // 2
            half = max(sub, ((half + sub - 1) // sub) * sub)
            block_rows = min(block_rows, half)
        if block_rows >= rows:
            block_rows = rows
    grid = (pl.cdiv(rows, block_rows),)

    cost = pl.CostEstimate(flops=0, transcendentals=0,
                           bytes_accessed=2 * padded_total * itemsize)

    out2d = pl.pallas_call(
        _copy_kernel,
        out_shape=jax.ShapeDtypeStruct((rows, cols), dtype),
        grid_spec=pl.GridSpec(
            grid=grid,
            in_specs=[pl.BlockSpec((block_rows, cols), lambda i: (i, 0))],
            out_specs=pl.BlockSpec((block_rows, cols), lambda i: (i, 0)),
        ),
        input_output_aliases={0: 0},    # reuse the input HBM buffer when donatable
        compiler_params=pltpu.CompilerParams(
            dimension_semantics=("parallel",),
            vmem_limit_bytes=_VMEM_LIMIT_BYTES,
        ),
        cost_estimate=cost,
    )(x2d)

    out_flat = out2d.reshape(padded_total)
    if padded_total != total:
        out_flat = out_flat[:total]
    return out_flat.reshape(orig_shape)


if __name__ == "__main__":
    key = jax.random.PRNGKey(0)
    # Small NCHW input consistent with an Inception-style block:
    # batch=2, channels=4, 16x16 spatial.
    x = jax.random.normal(key, (2, 4, 16, 16), dtype=jnp.float32)

    y = inception_block_v3_f6_forward(x)
    y = jax.block_until_ready(y)

    # Sanity: identity semantics (shape/dtype/value preserved).
    assert y.shape == x.shape and y.dtype == x.dtype
    assert bool(jnp.allclose(y, x))

    print("KERNEL_OK")
</pallas_src>

<mosaic_0001>
module attributes {stable_mosaic.version = 11 : i64} {
  func.func @_copy_kernel(%arg0: i32, %arg1: memref<8x256xf32, #tpu.memory_space<vmem>>, %arg2: memref<8x256xf32, #tpu.memory_space<vmem>>) attributes {dimension_semantics = [#tpu.dimension_semantics<parallel>], iteration_bounds = array<i64: 1>, scalar_prefetch = 0 : i64, scratch_operands = 0 : i64, tpu.core_type = #tpu.core_type<tc>, window_params = [{transform_indices = @transform_0, window_bounds = array<i64: 8, 256>}, {transform_indices = @transform_1, window_bounds = array<i64: 8, 256>}]} {
    %c0 = arith.constant 0 : index
    %c0_0 = arith.constant 0 : index
    %0 = vector.load %arg1[%c0, %c0_0] : memref<8x256xf32, #tpu.memory_space<vmem>>, vector<8x256xf32>
    %c0_1 = arith.constant 0 : index
    %c0_2 = arith.constant 0 : index
    %1 = vector.load %arg2[%c0_1, %c0_2] : memref<8x256xf32, #tpu.memory_space<vmem>>, vector<8x256xf32>
    tpu.vector_store %arg2[%c0_1, %c0_2], %0 {strides = array<i32>} : memref<8x256xf32, #tpu.memory_space<vmem>>, vector<8x256xf32>,
    return
  }
  func.func @transform_0(%arg0: i32) -> (i32, i32) {
    %c0_i32 = arith.constant 0 : i32
    %c0_i32_0 = arith.constant 0 : i32
    return %arg0, %c0_i32 : i32, i32
  }
  func.func @transform_1(%arg0: i32) -> (i32, i32) {
    %c0_i32 = arith.constant 0 : i32
    %c0_i32_0 = arith.constant 0 : i32
    return %arg0, %c0_i32 : i32, i32
  }
}

</mosaic_0001>

<bundles_post_ra>
// kernel: tpu_custom_call.1
= control target key start
LH: loop header
LB: loop body
LE: loop exit
PB: predicated region body
PF: predicated region fallthrough
CT: control target
= control target key end

     0   :  { %6 = vsyncpa [#allocation3], 0  ;;  %s126_s0 = inlined_call_operand.hbm [shape: f32[8,256], index: 0, kind: input, shape index: {}, may-alias: {0,1}]   ;;  %s127_s1 = inlined_call_operand.hbm [shape: f32[8,256], index: 1, kind: output, shape index: {}, may-alias: {0,1}]  }
   0x1   :  { %7 = vsyncpa [#allocation4], 0  ;;  %s90_s6 = smov [#allocation2]   ;;  %s42_s10 = scalar_lea.hbm %s126_s0, 256 }
   0x2   :  { %s14_s7 = sshll.u32 %s90_s6, 4  ;;  %p43_p0 = scmp.ne.s32.totalorder %s126_s0, %s42_s10  ;;  %s15_s7 = int_to_ptr.vmem [resolvable:$true] %s14_s7 }
   0x3   :  { %p46_p1 = scmp.lt.u32.totalorder %s42_s10, %s126_s0 }
   0x5   :  { %p48_p2 = pnand %p46_p1, %p43_p0 }
   0x7   :  { %51 = shalt.err (!%p48_p2)
}
   0x8   :  { %s52_s15 = scalar_lea.vmem %s15_s7, 256  ;;  %p57_p4 = scmp.lt.s32.totalorder %s15_s7, %s15_s7 }
   0x9   :  { %p53_p3 = scmp.ne.s32.totalorder %s15_s7, %s52_s15  ;;  %p58_p5 = scmp.lt.s32.totalorder %s52_s15, %s52_s15 }
   0xb   :  { %p59_p6 = por %p58_p5, %p57_p4 }
   0xd   :  { %p60_p7 = pnand %p59_p6, %p53_p3 }
   0xf   :  { %63 = shalt.err (!%p60_p7)
}
  0x10   :  { %17 = dma.hbm_to_vmem [thread:$0]  %s126_s0, 256, %s15_s7, [#allocation3]  }
  0x11   :  { %86 = dma.done.wait [#allocation3], 256  }
  0x12   :  { %87 = vsyncadd [#allocation3], 4294967040  ;;  %s91_s18 = smov [#allocation5]   ;;  %v21_v0 = vld [vmem:[#allocation2] sm:$0xff]  ;;  %v22_v1 = vld [vmem:[#allocation2 + $0x8] sm:$0xff] }
  0x13   :  { %s31_s19 = sshll.u32 %s91_s18, 4  ;;  %23 = vst [vmem:[#allocation5] sm:$0xff] %v21_v0  ;;  %24 = vst [vmem:[#allocation5 + $0x8] sm:$0xff] %v22_v1  ;;  %s32_s19 = int_to_ptr.vmem [resolvable:$true] %s31_s19 }
  0x14   :  { %s64_s20 = scalar_lea.vmem %s32_s19, 256  ;;  %p69_p9 = scmp.lt.s32.totalorder %s32_s19, %s32_s19 }
  0x15   :  { %p65_p8 = scmp.ne.s32.totalorder %s32_s19, %s64_s20  ;;  %p70_p10 = scmp.lt.s32.totalorder %s64_s20, %s64_s20 }
  0x17   :  { %p71_p11 = por %p70_p10, %p69_p9 }
  0x19   :  { %p72_p12 = pnand %p71_p11, %p65_p8 }
  0x1b   :  { %75 = shalt.err (!%p72_p12)
}
  0x1c   :  { %s76_s0 = scalar_lea.hbm %s127_s1, 256 }
  0x1d   :  { %p77_p13 = scmp.ne.s32.totalorder %s127_s1, %s76_s0  ;;  %p80_p0 = scmp.lt.u32.totalorder %s76_s0, %s127_s1 }
  0x1f   :  { %p82_p1 = pnand %p80_p0, %p77_p13 }
  0x21   :  { %85 = shalt.err (!%p82_p1)
}
  0x22   :  { %34 = dma.vmem_to_hbm [thread:$0]  %s32_s19, 256, %s127_s1, [#allocation4]  }
  0x23   :  { %88 = dma.done.wait [#allocation4], 256  }
  0x24   :  { %89 = vsyncadd [#allocation4], 4294967040 }
  0x25   :  { %38 = vsyncpa [#allocation3], 1 }
  0x26   :  { %39 = vsyncpa [#allocation4], 1 }

</bundles_post_ra>
